<compile_context>
chip_gen: v5e
topology: v5e:2x2
jax: 0.10.0
libtpu: 0.0.40
codegen_flags: <defaults>
</compile_context>

<pallas_src>
import functools

import jax
import jax.numpy as jnp
from jax import lax
from jax.experimental import pallas as pl
from jax.experimental.pallas import tpu as pltpu

SELU_ALPHA = 1.6732632423543772
SELU_SCALE = 1.0507009873554805
NEG_PAD = -1e30  # padded classifier-bias lanes -> exp() == 0 in log-softmax


def _round_up(n, m):
    return ((n + m - 1) // m) * m


def _selu(x):
    return SELU_SCALE * jnp.where(x > 0, x, SELU_ALPHA * (jnp.exp(x) - 1.0))


def model_kernel(x_ref, wf_ref, bf_ref, w2_ref, b2_ref, wr_ref, br_ref,
                 w8c_ref, b8c_ref, out_ref, *, h4, h2, h2p):
    x = x_ref[...]                       # (TB, IN)  float32
    wf = wf_ref[...]                     # (IN, F1p) fused [w7 | w1 | w3 | w5]

    # --- fused first layer (one MXU pass for all four branches) ---
    z1 = jnp.dot(x, wf, preferred_element_type=jnp.float32) + bf_ref[...]   # (TB, F1p)
    a1 = _selu(z1)

    # --- fused (block-diagonal) regression second layer ---
    z2 = jnp.dot(a1, w2_ref[...], preferred_element_type=jnp.float32) + b2_ref[...]  # (TB, Rp)
    a2 = _selu(z2)

    # --- regression heads: Linear(h4, 1) as masked lane reductions (XLU) ---
    p = a2 * wr_ref[...]                 # (TB, Rp); pad lanes are zero
    lane = lax.broadcasted_iota(jnp.int32, p.shape, 1)

    def head(k):
        m = (lane >= k * h4) & (lane < (k + 1) * h4)
        s = jnp.sum(jnp.where(m, p, 0.0), axis=1, keepdims=True) + br_ref[k]
        return _selu(s)                  # (TB, 1)

    r1, r2, r3 = head(0), head(1), head(2)

    # --- classification first layer via exact rank-1 corrections ---
    # z1[:, :h2] == x @ w7 + b7 ; replace columns 1, 6, 11 of x pre-SELU.
    z7 = z1[:, :h2]
    for rk, c in ((r1, 1), (r2, 6), (r3, 11)):
        z7 = z7 + (rk - x[:, c:c + 1]) * wf[c:c + 1, :h2]
    h7 = _selu(z7)

    # --- classification second layer + classifier (shared lane-aligned slab) ---
    h8 = _selu(jnp.dot(h7, w8c_ref[:, :h2], preferred_element_type=jnp.float32)
               + b8c_ref[:, :h2])
    logits = (jnp.dot(h8, w8c_ref[:, h2p:], preferred_element_type=jnp.float32)
              + b8c_ref[:, h2p:])        # (TB, Cp), pad lanes ~= -1e30

    # --- LogSoftmax over the class dim (pad lanes contribute exp() == 0) ---
    m = jnp.max(logits, axis=1, keepdims=True)
    lse = jnp.log(jnp.sum(jnp.exp(logits - m), axis=1, keepdims=True)) + m
    out_ref[...] = logits - lse


def init_params(key, input_size, hidden_size, category_size):
    """Deterministic init. Linear weights stored as (in, out); regression-head
    weights stored as (1, h4) (lane-reduction form of Linear(h4, 1))."""
    h4 = hidden_size * 4
    h2 = hidden_size * 2
    shapes = [
        ("w1", (input_size, h4)), ("b1", (1, h4)),
        ("w2", (h4, h4)),         ("b2", (1, h4)),
        ("wr1", (1, h4)),         ("br1", (1, 1)),
        ("w3", (input_size, h4)), ("b3", (1, h4)),
        ("w4", (h4, h4)),         ("b4", (1, h4)),
        ("wr2", (1, h4)),         ("br2", (1, 1)),
        ("w5", (input_size, h4)), ("b5", (1, h4)),
        ("w6", (h4, h4)),         ("b6", (1, h4)),
        ("wr3", (1, h4)),         ("br3", (1, 1)),
        ("w7", (input_size, h2)), ("b7", (1, h2)),
        ("w8", (h2, h2)),         ("b8", (1, h2)),
        ("wc", (h2, category_size)), ("bc", (1, category_size)),
    ]
    keys = jax.random.split(key, len(shapes))
    return [0.1 * jax.random.normal(k, shape, dtype=jnp.float32)
            for (_, shape), k in zip(shapes, keys)]


def pack_params(params, input_size, hidden_size, category_size):
    """Pack the 25 raw parameter arrays into 8 padded, lane-aligned slabs."""
    assert input_size >= 12, "module replaces columns 1, 6, 11 of the input"
    (w1, b1, w2, b2, wr1, br1,
     w3, b3, w4, b4, wr2, br2,
     w5, b5, w6, b6, wr3, br3,
     w7, b7, w8, b8, wc, bc) = params
    h4 = hidden_size * 4
    h2 = hidden_size * 2
    R = 3 * h4
    F1p = _round_up(h2 + R, 128)
    Rp = _round_up(R, 128)
    h2p = _round_up(h2, 128)
    Cp = _round_up(category_size, 128)

    wf = jnp.zeros((input_size, F1p), jnp.float32).at[:, :h2].set(w7)
    bf = jnp.zeros((1, F1p), jnp.float32).at[:, :h2].set(b7)
    w2b = jnp.zeros((F1p, Rp), jnp.float32)
    b2b = jnp.zeros((1, Rp), jnp.float32)
    wr = jnp.zeros((1, Rp), jnp.float32)
    branches = [(w1, b1, w2, b2, wr1), (w3, b3, w4, b4, wr2), (w5, b5, w6, b6, wr3)]
    for k, (wa, ba, wb, bb, wrk) in enumerate(branches):
        lo = h2 + k * h4
        wf = wf.at[:, lo:lo + h4].set(wa)
        bf = bf.at[:, lo:lo + h4].set(ba)
        w2b = w2b.at[lo:lo + h4, k * h4:(k + 1) * h4].set(wb)
        b2b = b2b.at[:, k * h4:(k + 1) * h4].set(bb)
        wr = wr.at[:, k * h4:(k + 1) * h4].set(wrk)
    br = jnp.concatenate([br1.reshape(-1), br2.reshape(-1), br3.reshape(-1)])
    br = br.astype(jnp.float32)                            # (3,) -> SMEM scalars

    w8c = jnp.zeros((h2, h2p + Cp), jnp.float32)
    w8c = w8c.at[:, :h2].set(w8).at[:, h2p:h2p + category_size].set(wc)
    b8c = jnp.zeros((1, h2p + Cp), jnp.float32).at[:, :h2].set(b8)
    b8c = b8c.at[:, h2p:].set(NEG_PAD)
    b8c = b8c.at[:, h2p:h2p + category_size].set(bc)
    return (wf, bf, w2b, b2b, wr, br, w8c, b8c)


@functools.partial(jax.jit, static_argnames=("hidden_size", "category_size"))
def model_forward(x, packed, *, hidden_size, category_size):
    wf, bf, w2b, b2b, wr, br, w8c, b8c = packed
    B, IN = x.shape
    h4 = hidden_size * 4
    h2 = hidden_size * 2
    h2p = _round_up(h2, 128)
    F1p = wf.shape[1]
    Rp = w2b.shape[1]
    WC = w8c.shape[1]          # h2p + Cp
    Cp = WC - h2p

    # Batch tiling: one block for small B, 512-row tiles (parallel grid) for large B.
    if B <= 512:
        TB = _round_up(B, 8)
        Bp = TB
    else:
        TB = 512
        Bp = _round_up(B, TB)
    if Bp != B:
        x = jnp.pad(x, ((0, Bp - B), (0, 0)))

    kernel = functools.partial(model_kernel, h4=h4, h2=h2, h2p=h2p)
    out = pl.pallas_call(
        kernel,
        out_shape=jax.ShapeDtypeStruct((Bp, Cp), jnp.float32),
        grid=(Bp // TB,),
        in_specs=[
            pl.BlockSpec((TB, IN), lambda i: (i, 0)),      # x (batch-tiled)
            pl.BlockSpec((IN, F1p), lambda i: (0, 0)),     # fused first-layer weights
            pl.BlockSpec((1, F1p), lambda i: (0, 0)),      # fused first-layer biases
            pl.BlockSpec((F1p, Rp), lambda i: (0, 0)),     # block-diag second-layer weights
            pl.BlockSpec((1, Rp), lambda i: (0, 0)),       # second-layer biases
            pl.BlockSpec((1, Rp), lambda i: (0, 0)),       # regression-head weights
            pl.BlockSpec(memory_space=pltpu.MemorySpace.SMEM),  # regression-head biases (3,)
            pl.BlockSpec((h2, WC), lambda i: (0, 0)),      # [w8 | wc] slab
            pl.BlockSpec((1, WC), lambda i: (0, 0)),       # [b8 | bc] slab
        ],
        out_specs=pl.BlockSpec((TB, Cp), lambda i: (i, 0)),
        compiler_params=pltpu.CompilerParams(
            dimension_semantics=("parallel",)),
    )(x, wf, bf, w2b, b2b, wr, br, w8c, b8c)
    return out[:B, :category_size]


def reference_forward(x, params):
    (w1, b1, w2, b2, wr1, br1,
     w3, b3, w4, b4, wr2, br2,
     w5, b5, w6, b6, wr3, br3,
     w7, b7, w8, b8, wc, bc) = params

    def branch(wA, bA, wB, bB, wR, bR):
        h = _selu(x @ wA + bA)
        h = _selu(h @ wB + bB)
        return _selu(jnp.sum(h * wR, axis=1, keepdims=True) + bR)

    r1 = branch(w1, b1, w2, b2, wr1, br1)
    r2 = branch(w3, b3, w4, b4, wr2, br2)
    r3 = branch(w5, b5, w6, b6, wr3, br3)
    new_x = x.at[:, 1].set(r1[:, 0]).at[:, 6].set(r2[:, 0]).at[:, 11].set(r3[:, 0])
    h = _selu(new_x @ w7 + b7)
    h = _selu(h @ w8 + b8)
    logits = h @ wc + bc
    return jax.nn.log_softmax(logits, axis=1)


if __name__ == "__main__":
    # Small shapes consistent with the module (input_size must exceed column 11).
    B, INPUT_SIZE, HIDDEN_SIZE, CATEGORY_SIZE = 8, 16, 8, 4

    key = jax.random.PRNGKey(0)
    kx, kp = jax.random.split(key)
    x = jax.random.normal(kx, (B, INPUT_SIZE), dtype=jnp.float32)
    params = init_params(kp, INPUT_SIZE, HIDDEN_SIZE, CATEGORY_SIZE)
    packed = pack_params(params, INPUT_SIZE, HIDDEN_SIZE, CATEGORY_SIZE)

    out = model_forward(x, packed, hidden_size=HIDDEN_SIZE,
                        category_size=CATEGORY_SIZE)
    out = jax.block_until_ready(out)

    ref = reference_forward(x, params)
    assert out.shape == (B, CATEGORY_SIZE)
    assert jnp.allclose(out, ref, atol=1e-4, rtol=1e-4), "mismatch vs JAX reference"

    print("KERNEL_OK")
</pallas_src>

<mosaic_0001>
module attributes {stable_mosaic.version = 11 : i64} {
  func.func @model_kernel(%arg0: i32, %arg1: memref<8x16xf32, #tpu.memory_space<vmem>>, %arg2: memref<16x128xf32, #tpu.memory_space<vmem>>, %arg3: memref<1x128xf32, #tpu.memory_space<vmem>>, %arg4: memref<128x128xf32, #tpu.memory_space<vmem>>, %arg5: memref<1x128xf32, #tpu.memory_space<vmem>>, %arg6: memref<1x128xf32, #tpu.memory_space<vmem>>, %arg7: memref<3xf32, #tpu.memory_space<smem>>, %arg8: memref<16x256xf32, #tpu.memory_space<vmem>>, %arg9: memref<1x256xf32, #tpu.memory_space<vmem>>, %arg10: memref<8x128xf32, #tpu.memory_space<vmem>>) attributes {dimension_semantics = [#tpu.dimension_semantics<parallel>], iteration_bounds = array<i64: 1>, scalar_prefetch = 0 : i64, scratch_operands = 0 : i64, tpu.core_type = #tpu.core_type<tc>, window_params = [{transform_indices = @transform_0, window_bounds = array<i64: 8, 16>}, {pipeline_mode = #tpu.pipeline_mode<synchronous>, transform_indices = @transform_1, window_bounds = array<i64: 16, 128>}, {pipeline_mode = #tpu.pipeline_mode<synchronous>, transform_indices = @transform_2, window_bounds = array<i64: 1, 128>}, {pipeline_mode = #tpu.pipeline_mode<synchronous>, transform_indices = @transform_3, window_bounds = array<i64: 128, 128>}, {pipeline_mode = #tpu.pipeline_mode<synchronous>, transform_indices = @transform_4, window_bounds = array<i64: 1, 128>}, {pipeline_mode = #tpu.pipeline_mode<synchronous>, transform_indices = @transform_5, window_bounds = array<i64: 1, 128>}, {transform_indices = @transform_6, window_bounds = array<i64: 3>}, {pipeline_mode = #tpu.pipeline_mode<synchronous>, transform_indices = @transform_7, window_bounds = array<i64: 16, 256>}, {pipeline_mode = #tpu.pipeline_mode<synchronous>, transform_indices = @transform_8, window_bounds = array<i64: 1, 256>}, {transform_indices = @transform_9, window_bounds = array<i64: 8, 128>}]} {
    %c0 = arith.constant 0 : index
    %c0_0 = arith.constant 0 : index
    %0 = vector.load %arg1[%c0, %c0_0] : memref<8x16xf32, #tpu.memory_space<vmem>>, vector<8x16xf32>
    %c0_1 = arith.constant 0 : index
    %c0_2 = arith.constant 0 : index
    %1 = vector.load %arg2[%c0_1, %c0_2] : memref<16x128xf32, #tpu.memory_space<vmem>>, vector<16x128xf32>
    %cst = arith.constant dense<0.000000e+00> : vector<8x128xf32>
    %2 = tpu.matmul %0, %1, %cst {dimension_numbers = #tpu.dot_dimension_numbers<[1], [0], [0], [1], [0, 0, 1, 1], [], []>} : vector<8x16xf32>, vector<16x128xf32>, vector<8x128xf32> -> vector<8x128xf32>
    %c0_3 = arith.constant 0 : index
    %c0_4 = arith.constant 0 : index
    %3 = vector.load %arg3[%c0_3, %c0_4] : memref<1x128xf32, #tpu.memory_space<vmem>>, vector<1x128xf32>
    %4 = vector.broadcast %3 : vector<1x128xf32> to vector<8x128xf32>
    %5 = arith.addf %2, %4 : vector<8x128xf32>
    %cst_5 = arith.constant 0.000000e+00 : f32
    %6 = vector.broadcast %cst_5 : f32 to vector<8x128xf32>
    %7 = arith.cmpf ogt, %5, %6 : vector<8x128xf32>
    %8 = math.exp %5 : vector<8x128xf32>
    %cst_6 = arith.constant 1.000000e+00 : f32
    %9 = vector.broadcast %cst_6 : f32 to vector<8x128xf32>
    %10 = arith.subf %8, %9 : vector<8x128xf32>
    %cst_7 = arith.constant 1.67326319 : f32
    %11 = vector.broadcast %cst_7 : f32 to vector<8x128xf32>
    %12 = arith.mulf %11, %10 : vector<8x128xf32>
    %13 = arith.select %7, %5, %12 : vector<8x128xi1>, vector<8x128xf32>
    %cst_8 = arith.constant 1.05070102 : f32
    %14 = vector.broadcast %cst_8 : f32 to vector<8x128xf32>
    %15 = arith.mulf %14, %13 : vector<8x128xf32>
    %c0_9 = arith.constant 0 : index
    %c0_10 = arith.constant 0 : index
    %16 = vector.load %arg4[%c0_9, %c0_10] : memref<128x128xf32, #tpu.memory_space<vmem>>, vector<128x128xf32>
    %cst_11 = arith.constant dense<0.000000e+00> : vector<8x128xf32>
    %17 = tpu.matmul %15, %16, %cst_11 {dimension_numbers = #tpu.dot_dimension_numbers<[1], [0], [0], [1], [0, 0, 1, 1], [], []>} : vector<8x128xf32>, vector<128x128xf32>, vector<8x128xf32> -> vector<8x128xf32>
    %c0_12 = arith.constant 0 : index
    %c0_13 = arith.constant 0 : index
    %18 = vector.load %arg5[%c0_12, %c0_13] : memref<1x128xf32, #tpu.memory_space<vmem>>, vector<1x128xf32>
    %19 = vector.broadcast %18 : vector<1x128xf32> to vector<8x128xf32>
    %20 = arith.addf %17, %19 : vector<8x128xf32>
    %cst_14 = arith.constant 0.000000e+00 : f32
    %21 = vector.broadcast %cst_14 : f32 to vector<8x128xf32>
    %22 = arith.cmpf ogt, %20, %21 : vector<8x128xf32>
    %23 = math.exp %20 : vector<8x128xf32>
    %cst_15 = arith.constant 1.000000e+00 : f32
    %24 = vector.broadcast %cst_15 : f32 to vector<8x128xf32>
    %25 = arith.subf %23, %24 : vector<8x128xf32>
    %cst_16 = arith.constant 1.67326319 : f32
    %26 = vector.broadcast %cst_16 : f32 to vector<8x128xf32>
    %27 = arith.mulf %26, %25 : vector<8x128xf32>
    %28 = arith.select %22, %20, %27 : vector<8x128xi1>, vector<8x128xf32>
    %cst_17 = arith.constant 1.05070102 : f32
    %29 = vector.broadcast %cst_17 : f32 to vector<8x128xf32>
    %30 = arith.mulf %29, %28 : vector<8x128xf32>
    %c0_18 = arith.constant 0 : index
    %c0_19 = arith.constant 0 : index
    %31 = vector.load %arg6[%c0_18, %c0_19] : memref<1x128xf32, #tpu.memory_space<vmem>>, vector<1x128xf32>
    %32 = vector.broadcast %31 : vector<1x128xf32> to vector<8x128xf32>
    %33 = arith.mulf %30, %32 : vector<8x128xf32>
    %34 = tpu.iota {dimensions = array<i32: 1>} : vector<8x128xi32>
    %c0_i32 = arith.constant 0 : i32
    %35 = vector.broadcast %c0_i32 : i32 to vector<8x128xi32>
    %36 = arith.cmpi sge, %34, %35 : vector<8x128xi32>
    %c32_i32 = arith.constant 32 : i32
    %37 = vector.broadcast %c32_i32 : i32 to vector<8x128xi32>
    %38 = arith.cmpi slt, %34, %37 : vector<8x128xi32>
    %39 = arith.andi %36, %38 : vector<8x128xi1>
    %cst_20 = arith.constant 0.000000e+00 : f32
    %40 = vector.broadcast %cst_20 : f32 to vector<8x128xf32>
    %41 = arith.select %39, %33, %40 : vector<8x128xi1>, vector<8x128xf32>
    %cst_21 = arith.constant dense<0.000000e+00> : vector<8xf32>
    %42 = vector.multi_reduction <add>, %41, %cst_21 [1] : vector<8x128xf32> to vector<8xf32>
    %43 = vector.shape_cast %42 : vector<8xf32> to vector<8x1xf32>
    %c0_22 = arith.constant 0 : index
    %44 = memref.load %arg7[%c0_22] : memref<3xf32, #tpu.memory_space<smem>>
    %45 = vector.broadcast %44 : f32 to vector<8x1xf32>
    %46 = arith.addf %43, %45 : vector<8x1xf32>
    %cst_23 = arith.constant 0.000000e+00 : f32
    %47 = vector.broadcast %cst_23 : f32 to vector<8x1xf32>
    %48 = arith.cmpf ogt, %46, %47 : vector<8x1xf32>
    %49 = math.exp %46 : vector<8x1xf32>
    %cst_24 = arith.constant 1.000000e+00 : f32
    %50 = vector.broadcast %cst_24 : f32 to vector<8x1xf32>
    %51 = arith.subf %49, %50 : vector<8x1xf32>
    %cst_25 = arith.constant 1.67326319 : f32
    %52 = vector.broadcast %cst_25 : f32 to vector<8x1xf32>
    %53 = arith.mulf %52, %51 : vector<8x1xf32>
    %54 = arith.select %48, %46, %53 : vector<8x1xi1>, vector<8x1xf32>
    %cst_26 = arith.constant 1.05070102 : f32
    %55 = vector.broadcast %cst_26 : f32 to vector<8x1xf32>
    %56 = arith.mulf %55, %54 : vector<8x1xf32>
    %c32_i32_27 = arith.constant 32 : i32
    %57 = vector.broadcast %c32_i32_27 : i32 to vector<8x128xi32>
    %58 = arith.cmpi sge, %34, %57 : vector<8x128xi32>
    %c64_i32 = arith.constant 64 : i32
    %59 = vector.broadcast %c64_i32 : i32 to vector<8x128xi32>
    %60 = arith.cmpi slt, %34, %59 : vector<8x128xi32>
    %61 = arith.andi %58, %60 : vector<8x128xi1>
    %cst_28 = arith.constant 0.000000e+00 : f32
    %62 = vector.broadcast %cst_28 : f32 to vector<8x128xf32>
    %63 = arith.select %61, %33, %62 : vector<8x128xi1>, vector<8x128xf32>
    %cst_29 = arith.constant dense<0.000000e+00> : vector<8xf32>
    %64 = vector.multi_reduction <add>, %63, %cst_29 [1] : vector<8x128xf32> to vector<8xf32>
    %65 = vector.shape_cast %64 : vector<8xf32> to vector<8x1xf32>
    %c1 = arith.constant 1 : index
    %66 = memref.load %arg7[%c1] : memref<3xf32, #tpu.memory_space<smem>>
    %67 = vector.broadcast %66 : f32 to vector<8x1xf32>
    %68 = arith.addf %65, %67 : vector<8x1xf32>
    %cst_30 = arith.constant 0.000000e+00 : f32
    %69 = vector.broadcast %cst_30 : f32 to vector<8x1xf32>
    %70 = arith.cmpf ogt, %68, %69 : vector<8x1xf32>
    %71 = math.exp %68 : vector<8x1xf32>
    %cst_31 = arith.constant 1.000000e+00 : f32
    %72 = vector.broadcast %cst_31 : f32 to vector<8x1xf32>
    %73 = arith.subf %71, %72 : vector<8x1xf32>
    %cst_32 = arith.constant 1.67326319 : f32
    %74 = vector.broadcast %cst_32 : f32 to vector<8x1xf32>
    %75 = arith.mulf %74, %73 : vector<8x1xf32>
    %76 = arith.select %70, %68, %75 : vector<8x1xi1>, vector<8x1xf32>
    %cst_33 = arith.constant 1.05070102 : f32
    %77 = vector.broadcast %cst_33 : f32 to vector<8x1xf32>
    %78 = arith.mulf %77, %76 : vector<8x1xf32>
    %c64_i32_34 = arith.constant 64 : i32
    %79 = vector.broadcast %c64_i32_34 : i32 to vector<8x128xi32>
    %80 = arith.cmpi sge, %34, %79 : vector<8x128xi32>
    %c96_i32 = arith.constant 96 : i32
    %81 = vector.broadcast %c96_i32 : i32 to vector<8x128xi32>
    %82 = arith.cmpi slt, %34, %81 : vector<8x128xi32>
    %83 = arith.andi %80, %82 : vector<8x128xi1>
    %cst_35 = arith.constant 0.000000e+00 : f32
    %84 = vector.broadcast %cst_35 : f32 to vector<8x128xf32>
    %85 = arith.select %83, %33, %84 : vector<8x128xi1>, vector<8x128xf32>
    %cst_36 = arith.constant dense<0.000000e+00> : vector<8xf32>
    %86 = vector.multi_reduction <add>, %85, %cst_36 [1] : vector<8x128xf32> to vector<8xf32>
    %87 = vector.shape_cast %86 : vector<8xf32> to vector<8x1xf32>
    %c2 = arith.constant 2 : index
    %88 = memref.load %arg7[%c2] : memref<3xf32, #tpu.memory_space<smem>>
    %89 = vector.broadcast %88 : f32 to vector<8x1xf32>
    %90 = arith.addf %87, %89 : vector<8x1xf32>
    %cst_37 = arith.constant 0.000000e+00 : f32
    %91 = vector.broadcast %cst_37 : f32 to vector<8x1xf32>
    %92 = arith.cmpf ogt, %90, %91 : vector<8x1xf32>
    %93 = math.exp %90 : vector<8x1xf32>
    %cst_38 = arith.constant 1.000000e+00 : f32
    %94 = vector.broadcast %cst_38 : f32 to vector<8x1xf32>
    %95 = arith.subf %93, %94 : vector<8x1xf32>
    %cst_39 = arith.constant 1.67326319 : f32
    %96 = vector.broadcast %cst_39 : f32 to vector<8x1xf32>
    %97 = arith.mulf %96, %95 : vector<8x1xf32>
    %98 = arith.select %92, %90, %97 : vector<8x1xi1>, vector<8x1xf32>
    %cst_40 = arith.constant 1.05070102 : f32
    %99 = vector.broadcast %cst_40 : f32 to vector<8x1xf32>
    %100 = arith.mulf %99, %98 : vector<8x1xf32>
    %101 = vector.extract_strided_slice %5 {offsets = [0, 0], sizes = [8, 16], strides = [1, 1]} : vector<8x128xf32> to vector<8x16xf32>
    %102 = vector.extract_strided_slice %0 {offsets = [0, 1], sizes = [8, 1], strides = [1, 1]} : vector<8x16xf32> to vector<8x1xf32>
    %103 = arith.subf %56, %102 : vector<8x1xf32>
    %104 = vector.extract_strided_slice %1 {offsets = [1, 0], sizes = [1, 16], strides = [1, 1]} : vector<16x128xf32> to vector<1x16xf32>
    %105 = vector.broadcast %103 : vector<8x1xf32> to vector<8x16xf32>
    %106 = vector.broadcast %104 : vector<1x16xf32> to vector<8x16xf32>
    %107 = arith.mulf %105, %106 : vector<8x16xf32>
    %108 = arith.addf %101, %107 : vector<8x16xf32>
    %109 = vector.extract_strided_slice %0 {offsets = [0, 6], sizes = [8, 1], strides = [1, 1]} : vector<8x16xf32> to vector<8x1xf32>
    %110 = arith.subf %78, %109 : vector<8x1xf32>
    %111 = vector.extract_strided_slice %1 {offsets = [6, 0], sizes = [1, 16], strides = [1, 1]} : vector<16x128xf32> to vector<1x16xf32>
    %112 = vector.broadcast %110 : vector<8x1xf32> to vector<8x16xf32>
    %113 = vector.broadcast %111 : vector<1x16xf32> to vector<8x16xf32>
    %114 = arith.mulf %112, %113 : vector<8x16xf32>
    %115 = arith.addf %108, %114 : vector<8x16xf32>
    %116 = vector.extract_strided_slice %0 {offsets = [0, 11], sizes = [8, 1], strides = [1, 1]} : vector<8x16xf32> to vector<8x1xf32>
    %117 = arith.subf %100, %116 : vector<8x1xf32>
    %118 = vector.extract_strided_slice %1 {offsets = [11, 0], sizes = [1, 16], strides = [1, 1]} : vector<16x128xf32> to vector<1x16xf32>
    %119 = vector.broadcast %117 : vector<8x1xf32> to vector<8x16xf32>
    %120 = vector.broadcast %118 : vector<1x16xf32> to vector<8x16xf32>
    %121 = arith.mulf %119, %120 : vector<8x16xf32>
    %122 = arith.addf %115, %121 : vector<8x16xf32>
    %cst_41 = arith.constant 0.000000e+00 : f32
    %123 = vector.broadcast %cst_41 : f32 to vector<8x16xf32>
    %124 = arith.cmpf ogt, %122, %123 : vector<8x16xf32>
    %125 = math.exp %122 : vector<8x16xf32>
    %cst_42 = arith.constant 1.000000e+00 : f32
    %126 = vector.broadcast %cst_42 : f32 to vector<8x16xf32>
    %127 = arith.subf %125, %126 : vector<8x16xf32>
    %cst_43 = arith.constant 1.67326319 : f32
    %128 = vector.broadcast %cst_43 : f32 to vector<8x16xf32>
    %129 = arith.mulf %128, %127 : vector<8x16xf32>
    %130 = arith.select %124, %122, %129 : vector<8x16xi1>, vector<8x16xf32>
    %cst_44 = arith.constant 1.05070102 : f32
    %131 = vector.broadcast %cst_44 : f32 to vector<8x16xf32>
    %132 = arith.mulf %131, %130 : vector<8x16xf32>
    %c0_45 = arith.constant 0 : index
    %c0_46 = arith.constant 0 : index
    %133 = vector.load %arg8[%c0_45, %c0_46] : memref<16x256xf32, #tpu.memory_space<vmem>>, vector<16x16xf32>
    %cst_47 = arith.constant dense<0.000000e+00> : vector<8x16xf32>
    %134 = tpu.matmul %132, %133, %cst_47 {dimension_numbers = #tpu.dot_dimension_numbers<[1], [0], [0], [1], [0, 0, 1, 1], [], []>} : vector<8x16xf32>, vector<16x16xf32>, vector<8x16xf32> -> vector<8x16xf32>
    %c0_48 = arith.constant 0 : index
    %c0_49 = arith.constant 0 : index
    %135 = vector.load %arg9[%c0_48, %c0_49] : memref<1x256xf32, #tpu.memory_space<vmem>>, vector<1x16xf32>
    %136 = vector.broadcast %135 : vector<1x16xf32> to vector<8x16xf32>
    %137 = arith.addf %134, %136 : vector<8x16xf32>
    %cst_50 = arith.constant 0.000000e+00 : f32
    %138 = vector.broadcast %cst_50 : f32 to vector<8x16xf32>
    %139 = arith.cmpf ogt, %137, %138 : vector<8x16xf32>
    %140 = math.exp %137 : vector<8x16xf32>
    %cst_51 = arith.constant 1.000000e+00 : f32
    %141 = vector.broadcast %cst_51 : f32 to vector<8x16xf32>
    %142 = arith.subf %140, %141 : vector<8x16xf32>
    %cst_52 = arith.constant 1.67326319 : f32
    %143 = vector.broadcast %cst_52 : f32 to vector<8x16xf32>
    %144 = arith.mulf %143, %142 : vector<8x16xf32>
    %145 = arith.select %139, %137, %144 : vector<8x16xi1>, vector<8x16xf32>
    %cst_53 = arith.constant 1.05070102 : f32
    %146 = vector.broadcast %cst_53 : f32 to vector<8x16xf32>
    %147 = arith.mulf %146, %145 : vector<8x16xf32>
    %c0_54 = arith.constant 0 : index
    %c128 = arith.constant 128 : index
    %148 = vector.load %arg8[%c0_54, %c128] : memref<16x256xf32, #tpu.memory_space<vmem>>, vector<16x128xf32>
    %cst_55 = arith.constant dense<0.000000e+00> : vector<8x128xf32>
    %149 = tpu.matmul %147, %148, %cst_55 {dimension_numbers = #tpu.dot_dimension_numbers<[1], [0], [0], [1], [0, 0, 1, 1], [], []>} : vector<8x16xf32>, vector<16x128xf32>, vector<8x128xf32> -> vector<8x128xf32>
    %c0_56 = arith.constant 0 : index
    %c128_57 = arith.constant 128 : index
    %150 = vector.load %arg9[%c0_56, %c128_57] : memref<1x256xf32, #tpu.memory_space<vmem>>, vector<1x128xf32>
    %151 = vector.broadcast %150 : vector<1x128xf32> to vector<8x128xf32>
    %152 = arith.addf %149, %151 : vector<8x128xf32>
    %cst_58 = arith.constant dense<0xFF800000> : vector<8xf32>
    %153 = vector.multi_reduction <maximumf>, %152, %cst_58 [1] : vector<8x128xf32> to vector<8xf32>
    %154 = vector.shape_cast %153 : vector<8xf32> to vector<8x1xf32>
    %155 = vector.broadcast %154 : vector<8x1xf32> to vector<8x128xf32>
    %156 = arith.subf %152, %155 : vector<8x128xf32>
    %157 = math.exp %156 : vector<8x128xf32>
    %cst_59 = arith.constant dense<0.000000e+00> : vector<8xf32>
    %158 = vector.multi_reduction <add>, %157, %cst_59 [1] : vector<8x128xf32> to vector<8xf32>
    %159 = vector.shape_cast %158 : vector<8xf32> to vector<8x1xf32>
    %160 = math.log %159 : vector<8x1xf32>
    %161 = arith.addf %160, %154 : vector<8x1xf32>
    %162 = vector.broadcast %161 : vector<8x1xf32> to vector<8x128xf32>
    %163 = arith.subf %152, %162 : vector<8x128xf32>
    %c0_60 = arith.constant 0 : index
    %c0_61 = arith.constant 0 : index
    %164 = vector.load %arg10[%c0_60, %c0_61] : memref<8x128xf32, #tpu.memory_space<vmem>>, vector<8x128xf32>
    tpu.vector_store %arg10[%c0_60, %c0_61], %163 {strides = array<i32>} : memref<8x128xf32, #tpu.memory_space<vmem>>, vector<8x128xf32>,
    return
  }
  func.func @transform_0(%arg0: i32) -> (i32, i32) {
    %c0_i32 = arith.constant 0 : i32
    %c0_i32_0 = arith.constant 0 : i32
    return %arg0, %c0_i32 : i32, i32
  }
  func.func @transform_1(%arg0: i32) -> (i32, i32) {
    %c0_i32 = arith.constant 0 : i32
    %c0_i32_0 = arith.constant 0 : i32
    %c0_i32_1 = arith.constant 0 : i32
    return %c0_i32, %c0_i32_0 : i32, i32
  }
  func.func @transform_2(%arg0: i32) -> (i32, i32) {
    %c0_i32 = arith.constant 0 : i32
    %c0_i32_0 = arith.constant 0 : i32
    %c0_i32_1 = arith.constant 0 : i32
    return %c0_i32, %c0_i32_0 : i32, i32
  }
  func.func @transform_3(%arg0: i32) -> (i32, i32) {
    %c0_i32 = arith.constant 0 : i32
    %c0_i32_0 = arith.constant 0 : i32
    %c0_i32_1 = arith.constant 0 : i32
    return %c0_i32, %c0_i32_0 : i32, i32
  }
  func.func @transform_4(%arg0: i32) -> (i32, i32) {
    %c0_i32 = arith.constant 0 : i32
    %c0_i32_0 = arith.constant 0 : i32
    %c0_i32_1 = arith.constant 0 : i32
    return %c0_i32, %c0_i32_0 : i32, i32
  }
  func.func @transform_5(%arg0: i32) -> (i32, i32) {
    %c0_i32 = arith.constant 0 : i32
    %c0_i32_0 = arith.constant 0 : i32
    %c0_i32_1 = arith.constant 0 : i32
    return %c0_i32, %c0_i32_0 : i32, i32
  }
  func.func @transform_6(%arg0: i32) -> i32 {
    %c0_i32 = arith.constant 0 : i32
    %c0_i32_0 = arith.constant 0 : i32
    return %c0_i32 : i32
  }
  func.func @transform_7(%arg0: i32) -> (i32, i32) {
    %c0_i32 = arith.constant 0 : i32
    %c0_i32_0 = arith.constant 0 : i32
    %c0_i32_1 = arith.constant 0 : i32
    return %c0_i32, %c0_i32_0 : i32, i32
  }
  func.func @transform_8(%arg0: i32) -> (i32, i32) {
    %c0_i32 = arith.constant 0 : i32
    %c0_i32_0 = arith.constant 0 : i32
    %c0_i32_1 = arith.constant 0 : i32
    return %c0_i32, %c0_i32_0 : i32, i32
  }
  func.func @transform_9(%arg0: i32) -> (i32, i32) {
    %c0_i32 = arith.constant 0 : i32
    %c0_i32_0 = arith.constant 0 : i32
    return %arg0, %c0_i32 : i32, i32
  }
}

</mosaic_0001>

<bundles_post_ra>
// kernel: model_forward.1
= control target key start
LH: loop header
LB: loop body
LE: loop exit
PB: predicated region body
PF: predicated region fallthrough
CT: control target
= control target key end

     0   :  { %14 = vsyncpa [#allocation3], 0  ;;  %s692_s0 = inlined_call_operand.hbm [shape: f32[8,16], index: 0, kind: input, shape index: {}]   ;;  %s693_s1 = inlined_call_operand.hbm [shape: f32[16,128], index: 1, kind: input, shape index: {}]   ;;  %s694_s2 = inlined_call_operand.vmem [shape: f32[1,128], index: 2, kind: input, shape index: {}]   ;;  %s695_s3 = inlined_call_operand.hbm [shape: f32[128,128], index: 3, kind: input, shape index: {}]   ;;  %s696_s4 = inlined_call_operand.hbm [shape: f32[1,128], index: 4, kind: input, shape index: {}]   ;;  %s697_s5 = inlined_call_operand.vmem [shape: f32[1,128], index: 5, kind: input, shape index: {}]   ;;  %s698_s6 = inlined_call_operand.vmem [shape: f32[3], index: 6, kind: input, shape index: {}]   ;;  %s699_s7 = inlined_call_operand.hbm [shape: f32[16,256], index: 7, kind: input, shape index: {}]   ;;  %s700_s8 = inlined_call_operand.vmem [shape: f32[1,256], index: 8, kind: input, shape index: {}]   ;;  %s701_s9 = inlined_call_operand.vmem [shape: f32[8,128], index: 9, kind: output, shape index: {}]  }
   0x1   :  { %15 = vsyncpa [#allocation6], 0 }
   0x2   :  { %16 = vsyncpa [#allocation9], 0  ;;  %s33_s11 = sshll.u32 %s693_s1, 4  ;;  %s34_s11 = int_to_ptr.hbm [resolvable:$true] %s33_s11 }
   0x3   :  { %17 = vsyncpa [#allocation4], 0  ;;  %s572_s12 = smov [#allocation5]   ;;  %s62_s16 = sshll.u32 %s696_s4, 4  ;;  %s63_s16 = int_to_ptr.hbm [resolvable:$true] %s62_s16 }
   0x4   :  { %s35_s13 = sshll.u32 %s572_s12, 4  ;;  %s573_s17 = smov 128   ;;  %s36_s13 = int_to_ptr.vmem [resolvable:$true] %s35_s13 }
   0x5   :  { %s574_s18 = smov 8   ;;  %s575_s19 = smov [#allocation8]  }
   0x6   :  { %41 = dma.hbm_to_vmem [thread:$0]  %s34_s11, 256, %s36_s13, [#allocation6], %s573_s17, %s573_s17, %s574_s18  }
   0x7   :  { %s64_s20 = sshll.u32 %s575_s19, 4  ;;  %s23_s23 = sshll.u32 %s692_s0, 4  ;;  %s65_s20 = int_to_ptr.vmem [resolvable:$true] %s64_s20  ;;  %s24_s23 = int_to_ptr.hbm [resolvable:$true] %s23_s23 }
   0x8   :  { %67 = dma.hbm_to_vmem [thread:$0]  %s63_s16, 16, %s65_s20, [#allocation9]  }
   0x9   :  { %s48_s25 = sshll.u32 %s695_s3, 4  ;;  %s576_s26 = smov [#allocation2]   ;;  %s49_s25 = int_to_ptr.hbm [resolvable:$true] %s48_s25 }
   0xa   :  { %s25_s27 = sshll.u32 %s576_s26, 4  ;;  %s577_s4 = smov [#allocation7]   ;;  %s26_s27 = int_to_ptr.vmem [resolvable:$true] %s25_s27 }
   0xb   :  { %28 = dma.hbm_to_vmem [thread:$0]  %s24_s23, 128, %s26_s27, [#allocation3]  }
   0xc   :  { %s50_s28 = sshll.u32 %s577_s4, 4  ;;  %s75_s10 = sshll.u32 %s698_s6, 4  ;;  %s51_s28 = int_to_ptr.vmem [resolvable:$true] %s50_s28  ;;  %s76_s10 = int_to_ptr.vmem [resolvable:$true] %s75_s10 }
   0xd   :  { %56 = dma.hbm_to_vmem [thread:$0]  %s49_s25, 2048, %s51_s28, [#allocation6], %s573_s17, %s573_s17, %s574_s18  }
   0xe   :  { %s83_s12 = sshll.u32 %s699_s7, 4  ;;  %s578_s13 = smov [#allocation10]   ;;  %s84_s12 = int_to_ptr.hbm [resolvable:$true] %s83_s12 }
   0xf   :  { %78 = dma.vmem_to_smem %s76_s10, 16, %s578_s13, [#allocation4]  }
  0x10   :  { %s579_s3 = smov [#allocation11]   ;;  %s580_s15 = smov 256  }
  0x11   :  { %s85_s14 = sshll.u32 %s579_s3, 4  ;;  %s581_s16 = smov 16   ;;  %s86_s14 = int_to_ptr.vmem [resolvable:$true] %s85_s14 }
  0x12   :  { %91 = dma.hbm_to_vmem [thread:$0]  %s84_s12, 512, %s86_s14, [#allocation9], %s580_s15, %s580_s15, %s581_s16  }
  0x13   :  { %562 = dma.done.wait [#allocation3], 128  }
  0x14   :  { %563 = vsyncadd [#allocation3], 4294967168 }
  0x15   :  { %564 = dma.done.wait [#allocation6], 2304  }
  0x16   :  { %565 = vsyncadd [#allocation6], 4294964992 }
  0x17   :  { %566 = dma.done.wait [#allocation9], 16  }
  0x18   :  { %567 = vsyncadd [#allocation9], 4294967280 }
  0x19   :  { %568 = dma.done.wait [#allocation4], 16  }
  0x1a   :  { %569 = vsyncadd [#allocation4], 4294967280 }
  0x1b   :  { %570 = dma.done.wait [#allocation9], 512  }
  0x1c   :  { %571 = vsyncadd [#allocation9], 4294966784 }
  0x1d   :  { %118 = sfence }
  0x1e   :  { %v653_v0 = vld [vmem:[#allocation5 + $0x8] sm:$0xff]  ;;  %v655_v1 = vld [vmem:[#allocation5] sm:$0xff]  ;;  %v658_v2 = vld [vmem:[#allocation2] sm:$0xff]  ;;  %vm126_vm0 = vcmask 130048   ;;  %v209_v32 = vlaneseq  ;;  %v582_v44 = vmov 1   ;;  %s217_s18 = sld [smem:[#allocation10]] }
  0x1f   :  { %144 = vmatpush.msra.mxu0 %v653_v0  ;;  %v172_v3 = vld [vmem:[#allocation7 + $0x78] sm:$0xff]  ;;  %v171_v4 = vld [vmem:[#allocation7 + $0x70] sm:$0xff]  ;;  %v170_v5 = vld [vmem:[#allocation7 + $0x68] sm:$0xff]  ;;  %403 = vset.pattern.permute.xlu1 %v582_v44  ;;  %v583_v45 = vmov 6   ;;  %s382_s19 = sld [smem:[#allocation10 + $0x1]]  ;;  %v584_v47 = vmov 11  }
  0x20   :  { %177 = vmatpush.msra.mxu1 %v172_v3  ;;  %v169_v6 = vld [vmem:[#allocation7 + $0x60] sm:$0xff]  ;;  %v168_v7 = vld [vmem:[#allocation7 + $0x58] sm:$0xff]  ;;  %v167_v8 = vld [vmem:[#allocation7 + $0x50] sm:$0xff]  ;;  %v210_v34 = vand.u32 127, %v209_v32  ;;  %404 = vset.pattern.permute.xlu2 %v583_v45 }
  0x21   :  { %145 = vmatpush.msra.mxu0 %v655_v1  ;;  %v166_v9 = vld [vmem:[#allocation7 + $0x48] sm:$0xff]  ;;  %v165_v10 = vld [vmem:[#allocation7 + $0x40] sm:$0xff]  ;;  %v164_v11 = vld [vmem:[#allocation7 + $0x38] sm:$0xff]  ;;  %406 = vset.pattern.permute.xlu0 %v584_v47 }
  0x22   :  { %378 = vmatmul.msk.f32.vlgmr.msra.gmra.mxu0 %vm126_vm0, %v658_v2  ;;  %178 = vmatpush.msra.mxu1 %v171_v4  ;;  %v163_v12 = vld [vmem:[#allocation7 + $0x30] sm:$0xff]  ;;  %v162_v13 = vld [vmem:[#allocation7 + $0x28] sm:$0xff]  ;;  %v161_v14 = vld [vmem:[#allocation7 + $0x20] sm:$0xff]  ;;  %vm243_vm3 = vcmp.ge.s32.totalorder %v210_v34, 64  ;;  %vm244_vm4 = vcmp.lt.s32.totalorder %v210_v34, 96  ;;  %vm212_vm6 = vcmp.lt.s32.totalorder %v210_v34, 32 }
  0x23   :  { %v160_v15 = vld [vmem:[#allocation7 + $0x18] sm:$0xff]  ;;  %v159_v16 = vld [vmem:[#allocation7 + $0x10] sm:$0xff]  ;;  %v158_v17 = vld [vmem:[#allocation7 + $0x8] sm:$0xff]  ;;  %vm227_vm7 = vcmp.ge.s32.totalorder %v210_v34, 32  ;;  %vm228_vm8 = vcmp.lt.s32.totalorder %v210_v34, 64 }
  0x24   :  { %179 = vmatpush.msra.mxu1 %v170_v5  ;;  %v157_v18 = vld [vmem:[#allocation7] sm:$0xff]  ;;  %v407_v19 = vld [vmem:[%s694_s2] ss:$0 sm:$0xff]  ;;  %vm245_vm5 = vmand %vm243_vm3, %vm244_vm4  ;;  %v218_v46 = vstv %s217_s18 }
  0x25   :  { %v408_v28 = vld [vmem:[#allocation8] ss:$0 sm:$0xff]  ;;  %v409_v37 = vld [vmem:[%s697_s5] ss:$0 sm:$0xff]  ;;  %vm229_vm9 = vmand %vm227_vm7, %vm228_vm8  ;;  %s384_s5 = sld [smem:[#allocation10 + $0x2]]  ;;  %v234_v54 = vstv %s382_s19 }
  0x26   :  { %180 = vmatpush.msra.mxu1 %v169_v6  ;;  %v411_v44 = vld [vmem:[%s700_s8 + $0x1] ss:$0 sm:$0xff] }
  0x28   :  { %181 = vmatpush.msra.mxu1 %v168_v7 }
  0x2a   :  { %182 = vmatpush.msra.mxu1 %v167_v8 }
  0x2b   :  { %v250_v49 = vstv %s384_s5 }
  0x2c   :  { %183 = vmatpush.msra.mxu1 %v166_v9 }
  0x2e   :  { %184 = vmatpush.msra.mxu1 %v165_v10 }
  0x30   :  { %185 = vmatpush.msra.mxu1 %v164_v11 }
  0x32   :  { %186 = vmatpush.msra.mxu1 %v163_v12 }
  0x34   :  { %187 = vmatpush.msra.mxu1 %v162_v13 }
  0x36   :  { %188 = vmatpush.msra.mxu1 %v161_v14 }
  0x38   :  { %189 = vmatpush.msra.mxu1 %v160_v15 }
  0x3a   :  { %190 = vmatpush.msra.mxu1 %v159_v16  ;;  %v294_v16 = vld [vmem:[#allocation11 + $0x10] sm:$0xff] }
  0x3b   :  { %316 = vmatpush.msra.mxu2 %v294_v16 }
  0x3c   :  { %191 = vmatpush.msra.mxu1 %v158_v17  ;;  %v293_v17 = vld [vmem:[#allocation11] sm:$0xff] }
  0x3d   :  { %317 = vmatpush.msra.mxu2 %v293_v17 }
  0x3e   :  { %192 = vmatpush.msra.mxu1 %v157_v18 }
  0x9f   :  { %v147_v20 = vpop.f32.mrf.mxu0 }
  0xa0   :  { %v666_v21 = vadd.f32 %v407_v19, %v147_v20  ;;  %v265_v19 = vperm.slane %v655_v1, 1  ;;  %v274_v20 = vperm.slane %v655_v1, 6  ;;  %v330_v1 = vld [vmem:[#allocation11 + $0x18] sm:$0xff] }
  0xa1   :  { %352 = vmatpush.msra.mxu3 %v330_v1 }
  0xa2   :  { %v151_v22 = vmul.f32 1.442695, %v666_v21  ;;  %vm150_vm1 = vcmp.gt.f32.partialorder %v666_v21, 0.0 }
  0xa4   :  { %412 = vpow2.f32 %v151_v22 }
  0xaa   :  { %v413_v23 = vpop.eup %412 }
  0xab   :  { %v379_v24 = vadd.f32 -1.0, %v413_v23  ;;  %v283_v23 = vperm.slane %v653_v0, 3  ;;  %v329_v0 = vld [vmem:[#allocation11 + $0x8] sm:$0xff] }
  0xac   :  { %353 = vmatpush.msra.mxu3 %v329_v0 }
  0xad   :  { %v154_v25 = vmul.f32 1.6732632, %v379_v24 }
  0xaf   :  { %v155_v26 = vsel %vm150_vm1, %v666_v21, %v154_v25 }
  0xb0   :  { %v156_v27 = vmul.f32 1.050701, %v155_v26 }
  0xb2   :  { %193 = vmatmul.f32.vlgmr.msra.gmra.mxu1 %v156_v27 }
 0x12f   :  { %v194_v29 = vpop.f32.mrf.mxu1 }
 0x130   :  { %v195_v30 = vadd.f32 %v408_v28, %v194_v29 }
 0x132   :  { %v198_v31 = vmul.f32 1.442695, %v195_v30  ;;  %vm197_vm2 = vcmp.gt.f32.partialorder %v195_v30, 0.0 }
 0x134   :  { %414 = vpow2.f32 %v198_v31 }
 0x13a   :  { %v415_v33 = vpop.eup %414 }
 0x13b   :  { %v380_v35 = vadd.f32 -1.0, %v415_v33 }
 0x13d   :  { %v201_v36 = vmul.f32 1.6732632, %v380_v35 }
 0x13f   :  { %v202_v38 = vsel %vm197_vm2, %v195_v30, %v201_v36 }
 0x140   :  { %v203_v39 = vmul.f32 1.050701, %v202_v38 }
 0x142   :  { %v208_v40 = vmul.f32 %v409_v37, %v203_v39 }
 0x144   :  { %v246_v41 = vsel %vm245_vm5, %v208_v40, 0.0  ;;  %v214_v42 = vsel %vm212_vm6, %v208_v40, 0.0  ;;  %v230_v43 = vsel %vm229_vm9, %v208_v40, 0.0 }
 0x145   :  { %247 = vadd.xlane.f32.xlu1 %v246_v41  ;;  %215 = vadd.xlane.f32.xlu0 %v214_v42 }
 0x14d   :  { %231 = vadd.xlane.f32.xlu0 %v230_v43 }
 0x1b8   :  { %v216_v48 = vpop.xlane.xlu0 %215  ;;  %v248_v50 = vpop.xlane.xlu1 %247 }
 0x1b9   :  { %v219_v51 = vadd.f32 %v218_v46, %v216_v48  ;;  %v251_v53 = vadd.f32 %v250_v49, %v248_v50 }
 0x1bb   :  { %v221_v52 = vmul.f32 1.442695, %v219_v51  ;;  %v253_v55 = vmul.f32 1.442695, %v251_v53  ;;  %vm220_vm10 = vcmp.gt.f32.partialorder %v219_v51, 0.0  ;;  %vm252_vm12 = vcmp.gt.f32.partialorder %v251_v53, 0.0 }
 0x1bd   :  { %416 = vpow2.f32 %v221_v52 }
 0x1be   :  { %418 = vpow2.f32 %v253_v55 }
 0x1c0   :  { %v232_v56 = vpop.xlane.xlu0 %231 }
 0x1c1   :  { %v235_v57 = vadd.f32 %v234_v54, %v232_v56 }
 0x1c3   :  { %v237_v58 = vmul.f32 1.442695, %v235_v57  ;;  %v417_v59 = vpop.eup %416  ;;  %vm236_vm11 = vcmp.gt.f32.partialorder %v235_v57, 0.0 }
 0x1c4   :  { %v381_v60 = vadd.f32 -1.0, %v417_v59  ;;  %v419_v63 = vpop.eup %418 }
 0x1c5   :  { %420 = vpow2.f32 %v237_v58  ;;  %v385_v7 = vadd.f32 -1.0, %v419_v63 }
 0x1c6   :  { %v224_v61 = vmul.f32 1.6732632, %v381_v60 }
 0x1c7   :  { %v256_v10 = vmul.f32 1.6732632, %v385_v7 }
 0x1c8   :  { %v225_v62 = vsel %vm220_vm10, %v219_v51, %v224_v61 }
 0x1c9   :  { %v226_v3 = vmul.f32 1.050701, %v225_v62  ;;  %v257_v13 = vsel %vm252_vm12, %v251_v53, %v256_v10 }
 0x1ca   :  { %v258_v14 = vmul.f32 1.050701, %v257_v13 }
 0x1cb   :  { %v421_v4 = vpop.eup %420  ;;  %v259_v6 = vsub.f32 %v226_v3, %v658_v2 }
 0x1cc   :  { %v383_v5 = vadd.f32 -1.0, %v421_v4  ;;  %v277_v15 = vsub.f32 %v258_v14, %v658_v2 }
 0x1cd   :  { %262 = vperm.xlu1 %403, %v259_v6  }
 0x1ce   :  { %v240_v8 = vmul.f32 1.6732632, %v383_v5 }
 0x1d0   :  { %v241_v9 = vsel %vm236_vm11, %v235_v57, %v240_v8 }
 0x1d1   :  { %v242_v11 = vmul.f32 1.050701, %v241_v9 }
 0x1d3   :  { %v268_v12 = vsub.f32 %v242_v11, %v658_v2 }
 0x1d5   :  { %271 = vperm.xlu2 %404, %v268_v12  }
 0x1dd   :  { %405 = vset.pattern.permute.xlu2 %v584_v47 }
 0x1de   :  { %280 = vperm.xlu2 %405, %v277_v15  }
 0x22f   :  { %v272_v18 = vpop.permute.xlu2 %271 }
 0x230   :  { %v275_v26 = vmul.f32 %v274_v20, %v272_v18 }
 0x238   :  { %v281_v25 = vpop.permute.xlu2 %280 }
 0x239   :  { %v284_v2 = vmul.f32 %v283_v23, %v281_v25 }
 0x23f   :  { %v263_v22 = vpop.permute.xlu1 %262 }
 0x240   :  { %v266_v24 = vmul.f32 %v265_v19, %v263_v22 }
 0x242   :  { %v267_v27 = vadd.f32 %v266_v24, %v666_v21  ;;  %v410_v21 = vld [vmem:[%s700_s8] ss:$0 sm:$0xff] }
 0x244   :  { %v276_v28 = vadd.f32 %v275_v26, %v267_v27 }
 0x246   :  { %v285_v29 = vadd.f32 %v284_v2, %v276_v28 }
 0x248   :  { %v287_v30 = vmul.f32 1.442695, %v285_v29  ;;  %vm286_vm13 = vcmp.gt.f32.partialorder %v285_v29, 0.0 }
 0x24a   :  { %422 = vpow2.f32 %v287_v30 }
 0x250   :  { %v423_v31 = vpop.eup %422 }
 0x251   :  { %v386_v32 = vadd.f32 -1.0, %v423_v31 }
 0x253   :  { %v290_v33 = vmul.f32 1.6732632, %v386_v32 }
 0x255   :  { %v291_v34 = vsel %vm286_vm13, %v285_v29, %v290_v33 }
 0x256   :  { %v292_v35 = vmul.f32 1.050701, %v291_v34 }
 0x258   :  { %387 = vmatmul.msk.f32.vlgmr.msra.gmra.mxu2 %vm126_vm0, %v292_v35 }
 0x2db   :  { %v319_v36 = vpop.f32.mrf.mxu2 }
 0x2dc   :  { %v320_v37 = vadd.f32 %v410_v21, %v319_v36 }
 0x2de   :  { %v323_v38 = vmul.f32 1.442695, %v320_v37  ;;  %vm322_vm14 = vcmp.gt.f32.partialorder %v320_v37, 0.0 }
 0x2e0   :  { %424 = vpow2.f32 %v323_v38 }
 0x2e6   :  { %v425_v39 = vpop.eup %424 }
 0x2e7   :  { %v388_v40 = vadd.f32 -1.0, %v425_v39 }
 0x2e9   :  { %v326_v41 = vmul.f32 1.6732632, %v388_v40 }
 0x2eb   :  { %v327_v42 = vsel %vm322_vm14, %v320_v37, %v326_v41 }
 0x2ec   :  { %v328_v43 = vmul.f32 1.050701, %v327_v42 }
 0x2ee   :  { %389 = vmatmul.msk.f32.vlgmr.msra.gmra.mxu3 %vm126_vm0, %v328_v43 }
 0x371   :  { %v355_v45 = vpop.f32.mrf.mxu3 }
 0x372   :  { %v356_v46 = vadd.f32 %v411_v44, %v355_v45 }
 0x374   :  { %358 = vmax.xlane.f32.xlu0 %v356_v46 }
 0x3e7   :  { %v359_v47 = vpop.xlane.xlu0 %358 }
 0x3e8   :  { %v360_v48 = vsub.f32 %v356_v46, %v359_v47 }
 0x3ea   :  { %v361_v49 = vmul.f32 1.442695, %v360_v48 }
 0x3ec   :  { %426 = vpow2.f32 %v361_v49 }
 0x3f2   :  { %v427_v50 = vpop.eup %426 }
 0x3f3   :  { %363 = vadd.xlane.f32.xlu2 %v427_v50 }
 0x466   :  { %v364_v51 = vpop.xlane.xlu2 %363 }
 0x467   :  { %428 = vlog2.f32 %v364_v51 }
 0x46d   :  { %v429_v52 = vpop.eup %428 }
 0x46e   :  { %v366_v53 = vmul.f32 0.6931472, %v429_v52 }
 0x470   :  { %v367_v54 = vadd.f32 %v366_v53, %v359_v47 }
 0x472   :  { %v368_v55 = vsub.f32 %v356_v46, %v367_v54 }
 0x474   :  { %369 = vst [vmem:[%s701_s9] sm:$0xff] %v368_v55 }
 0x475   :  { %374 = vsyncpa [#allocation3], 1 }
 0x476   :  { %375 = vsyncpa [#allocation6], 1 }
 0x477   :  { %376 = vsyncpa [#allocation9], 1 }
 0x478   :  { %377 = vsyncpa [#allocation4], 1 }

</bundles_post_ra>
